<compile_context>
chip_gen: v6e
topology: v6e:2x2x1
jax: 0.10.0
libtpu: 0.0.40
codegen_flags: <defaults>
</compile_context>

<pallas_src>
import jax
import jax.numpy as jnp
from jax import lax
from jax.experimental import pallas as pl
from jax.experimental.pallas import tpu as pltpu


def _round_up(a: int, b: int) -> int:
    return ((a + b - 1) // b) * b


def concat_squash_kernel(t_ref, x_ref, w_ref, p_ref, o_ref, acc_ref):
    k = pl.program_id(2)

    @pl.when(k == 0)
    def _():
        acc_ref[...] = jnp.zeros_like(acc_ref)

    # x_ref: (tm, tk), w_ref: (tn, tk) -> (tm, tn); contract along dim_in so the
    # weight can stay in its native (dim_out, dim_in) layout (no wrapper .T).
    acc_ref[...] += lax.dot_general(
        x_ref[...], w_ref[...],
        dimension_numbers=(((1,), (1,)), ((), ())),
        preferred_element_type=jnp.float32,
    )

    # Epilogue only on the last K step: bias, gate, hyper_bias, cast, store once.
    @pl.when(k == pl.num_programs(2) - 1)
    def _():
        t = t_ref[0]                        # scalar time from SMEM
        b_row = p_ref[0:1, :]               # (1, tn) layer bias
        wg_row = p_ref[1:2, :]              # (1, tn) hyper-gate weight
        bg_row = p_ref[2:3, :]              # (1, tn) hyper-gate bias
        wb_row = p_ref[3:4, :]              # (1, tn) hyper-bias weight
        gate = jax.nn.sigmoid(t * wg_row + bg_row)      # EUP, f32
        hyper_bias = t * wb_row
        o_ref[...] = ((acc_ref[...] + b_row) * gate + hyper_bias).astype(o_ref.dtype)


def concat_squash_linear(t, x, w_layer, b_layer, w_gate, b_gate, w_bias,
                         *, tm=256, tn=256, tk=256):
    """t: scalar (float), x: (B, dim_in). Parameters in PyTorch nn.Linear convention:
       w_layer: (dim_out, dim_in), b_layer: (dim_out,),
       w_gate:  (dim_out, 1),      b_gate:  (dim_out,),
       w_bias:  (dim_out, 1).
    """
    B, dim_in = x.shape
    dim_out = w_layer.shape[0]

    # Lane/sublane-dense padded sizes (lane = 128, sublane = 8 for f32).
    B_p = _round_up(B, 8)
    K_p = _round_up(dim_in, 128)
    N_p = _round_up(dim_out, 128)

    # Clamp tiles to the padded problem, then make padded dims tile multiples.
    tm = min(tm, B_p)
    tn = min(tn, N_p)
    tk = min(tk, K_p)
    B_p = _round_up(B_p, tm)
    K_p = _round_up(K_p, tk)
    N_p = _round_up(N_p, tn)

    x_p = jnp.pad(x, ((0, B_p - B), (0, K_p - dim_in)))
    w_p = jnp.pad(w_layer, ((0, N_p - dim_out), (0, K_p - dim_in)))

    # Pack the four per-feature parameter rows into one (8, N_p) VMEM input.
    params = jnp.stack(
        [
            b_layer.astype(jnp.float32),
            w_gate.reshape(-1).astype(jnp.float32),
            b_gate.astype(jnp.float32),
            w_bias.reshape(-1).astype(jnp.float32),
        ],
        axis=0,
    )                                                   # (4, dim_out)
    params = jnp.pad(params, ((0, 4), (0, N_p - dim_out)))  # (8, N_p)

    t_arr = jnp.asarray(t, dtype=jnp.float32).reshape((1,))

    grid = (B_p // tm, N_p // tn, K_p // tk)

    itemsize = jnp.dtype(x.dtype).itemsize
    tile_bytes = (2 * (tm * tk + tn * tk) * itemsize    # double-buffered x / W tiles
                  + 2 * 8 * tn * 4                      # packed params
                  + 2 * tm * tn * itemsize              # output tile
                  + tm * tn * 4)                        # f32 accumulator
    vmem_limit = int(min(64 * 1024 * 1024, max(4 * tile_bytes, 32 * 1024 * 1024)))

    cost = pl.CostEstimate(
        flops=2 * B_p * K_p * N_p,
        transcendentals=(B_p // tm) * N_p,              # sigmoid per output tile row
        bytes_accessed=(x_p.size * itemsize * (N_p // tn)
                        + w_p.size * itemsize * (B_p // tm)
                        + params.size * 4
                        + B_p * N_p * itemsize),
    )

    out_p = pl.pallas_call(
        concat_squash_kernel,
        out_shape=jax.ShapeDtypeStruct((B_p, N_p), x.dtype),
        grid=grid,
        in_specs=[
            pl.BlockSpec(memory_space=pltpu.SMEM),              # t (scalar)
            pl.BlockSpec((tm, tk), lambda i, j, k: (i, k)),     # x tile
            pl.BlockSpec((tn, tk), lambda i, j, k: (j, k)),     # W tile (native layout)
            pl.BlockSpec((8, tn), lambda i, j, k: (0, j)),      # packed params
        ],
        out_specs=pl.BlockSpec((tm, tn), lambda i, j, k: (i, j)),
        scratch_shapes=[pltpu.VMEM((tm, tn), jnp.float32)],
        compiler_params=pltpu.CompilerParams(
            dimension_semantics=("parallel", "parallel", "arbitrary"),
            vmem_limit_bytes=vmem_limit,
        ),
        cost_estimate=cost,
    )(t_arr, x_p, w_p, params)

    return out_p[:B, :dim_out]


def _reference(t, x, w_layer, b_layer, w_gate, b_gate, w_bias):
    t1 = jnp.asarray(t, jnp.float32).reshape(-1, 1)             # (1, 1)
    lin = x @ w_layer.T + b_layer                               # (B, dim_out)
    gate = jax.nn.sigmoid(t1 @ w_gate.T + b_gate)               # (1, dim_out)
    hyp_b = t1 @ w_bias.T                                       # (1, dim_out)
    return lin * gate + hyp_b


if __name__ == "__main__":
    # Small, deliberately non-(8,128)-aligned shapes; the wrapper pads to
    # lane/sublane-dense tiles and slices the result back.
    dim_in, dim_out, batch = 48, 96, 20

    key = jax.random.PRNGKey(0)
    k_x, k_w, k_b, k_wg, k_bg, k_wb = jax.random.split(key, 6)

    x = jax.random.normal(k_x, (batch, dim_in), dtype=jnp.float32)
    t = jnp.float32(0.37)

    # Deterministic parameter init (shapes follow nn.Linear in __init__)
    w_layer = jax.random.normal(k_w, (dim_out, dim_in), dtype=jnp.float32) * 0.1
    b_layer = jax.random.normal(k_b, (dim_out,), dtype=jnp.float32) * 0.1
    w_gate = jax.random.normal(k_wg, (dim_out, 1), dtype=jnp.float32) * 0.1
    b_gate = jax.random.normal(k_bg, (dim_out,), dtype=jnp.float32) * 0.1
    w_bias = jax.random.normal(k_wb, (dim_out, 1), dtype=jnp.float32) * 0.1

    out = concat_squash_linear(t, x, w_layer, b_layer, w_gate, b_gate, w_bias)
    out = jax.block_until_ready(out)

    ref = _reference(t, x, w_layer, b_layer, w_gate, b_gate, w_bias)
    assert out.shape == (batch, dim_out)
    assert jnp.allclose(out, ref, atol=1e-5, rtol=1e-5)

    print("KERNEL_OK")
</pallas_src>

<mosaic_0001>
module attributes {stable_mosaic.version = 11 : i64} {
  func.func @concat_squash_kernel(%arg0: i32, %arg1: i32, %arg2: i32, %arg3: memref<1xf32, #tpu.memory_space<smem>>, %arg4: memref<24x128xf32, #tpu.memory_space<vmem>>, %arg5: memref<128x128xf32, #tpu.memory_space<vmem>>, %arg6: memref<8x128xf32, #tpu.memory_space<vmem>>, %arg7: memref<24x128xf32, #tpu.memory_space<vmem>>, %arg8: memref<24x128xf32, #tpu.memory_space<vmem>>) attributes {dimension_semantics = [#tpu.dimension_semantics<parallel>, #tpu.dimension_semantics<parallel>, #tpu.dimension_semantics<arbitrary>], iteration_bounds = array<i64: 1, 1, 1>, scalar_prefetch = 0 : i64, scratch_operands = 1 : i64, tpu.core_type = #tpu.core_type<tc>, window_params = [{transform_indices = @transform_0, window_bounds = array<i64: 1>}, {transform_indices = @transform_1, window_bounds = array<i64: 24, 128>}, {transform_indices = @transform_2, window_bounds = array<i64: 128, 128>}, {transform_indices = @transform_3, window_bounds = array<i64: 8, 128>}, {transform_indices = @transform_4, window_bounds = array<i64: 24, 128>}]} {
    %c0_i32 = arith.constant 0 : i32
    %0 = arith.cmpi eq, %arg2, %c0_i32 : i32
    %1 = arith.extui %0 : i1 to i32
    %c0_i32_0 = arith.constant 0 : i32
    %2 = arith.cmpi ne, %1, %c0_i32_0 : i32
    scf.if %2 {
      %cst_10 = arith.constant 0.000000e+00 : f32
      %12 = vector.broadcast %cst_10 : f32 to vector<24x128xf32>
      %c0_11 = arith.constant 0 : index
      %c0_12 = arith.constant 0 : index
      %13 = vector.load %arg8[%c0_11, %c0_12] : memref<24x128xf32, #tpu.memory_space<vmem>>, vector<24x128xf32>
      tpu.vector_store %arg8[%c0_11, %c0_12], %12 {strides = array<i32>} : memref<24x128xf32, #tpu.memory_space<vmem>>, vector<24x128xf32>,
    } else {
    }
    %c0 = arith.constant 0 : index
    %c0_1 = arith.constant 0 : index
    %3 = vector.load %arg8[%c0, %c0_1] : memref<24x128xf32, #tpu.memory_space<vmem>>, vector<24x128xf32>
    %c0_2 = arith.constant 0 : index
    %c0_3 = arith.constant 0 : index
    %4 = vector.load %arg4[%c0_2, %c0_3] : memref<24x128xf32, #tpu.memory_space<vmem>>, vector<24x128xf32>
    %c0_4 = arith.constant 0 : index
    %c0_5 = arith.constant 0 : index
    %5 = vector.load %arg5[%c0_4, %c0_5] : memref<128x128xf32, #tpu.memory_space<vmem>>, vector<128x128xf32>
    %cst = arith.constant dense<0.000000e+00> : vector<24x128xf32>
    %6 = tpu.matmul %4, %5, %cst {dimension_numbers = #tpu.dot_dimension_numbers<[1], [1], [0], [0], [0, 0, 1, 0], [], []>} : vector<24x128xf32>, vector<128x128xf32>, vector<24x128xf32> -> vector<24x128xf32>
    %7 = arith.addf %3, %6 : vector<24x128xf32>
    %c0_6 = arith.constant 0 : index
    %c0_7 = arith.constant 0 : index
    %8 = vector.load %arg8[%c0_6, %c0_7] : memref<24x128xf32, #tpu.memory_space<vmem>>, vector<24x128xf32>
    tpu.vector_store %arg8[%c0_6, %c0_7], %7 {strides = array<i32>} : memref<24x128xf32, #tpu.memory_space<vmem>>, vector<24x128xf32>,
    %c0_i32_8 = arith.constant 0 : i32
    %9 = arith.cmpi eq, %arg2, %c0_i32_8 : i32
    %10 = arith.extui %9 : i1 to i32
    %c0_i32_9 = arith.constant 0 : i32
    %11 = arith.cmpi ne, %10, %c0_i32_9 : i32
    scf.if %11 {
      %c0_10 = arith.constant 0 : index
      %12 = memref.load %arg3[%c0_10] : memref<1xf32, #tpu.memory_space<smem>>
      %c0_11 = arith.constant 0 : index
      %c0_12 = arith.constant 0 : index
      %13 = vector.load %arg6[%c0_11, %c0_12] : memref<8x128xf32, #tpu.memory_space<vmem>>, vector<1x128xf32>
      %c1 = arith.constant 1 : index
      %c0_13 = arith.constant 0 : index
      %14 = vector.load %arg6[%c1, %c0_13] : memref<8x128xf32, #tpu.memory_space<vmem>>, vector<1x128xf32>
      %c2 = arith.constant 2 : index
      %c0_14 = arith.constant 0 : index
      %15 = vector.load %arg6[%c2, %c0_14] : memref<8x128xf32, #tpu.memory_space<vmem>>, vector<1x128xf32>
      %c3 = arith.constant 3 : index
      %c0_15 = arith.constant 0 : index
      %16 = vector.load %arg6[%c3, %c0_15] : memref<8x128xf32, #tpu.memory_space<vmem>>, vector<1x128xf32>
      %17 = vector.broadcast %12 : f32 to vector<1x128xf32>
      %18 = arith.mulf %17, %14 : vector<1x128xf32>
      %19 = arith.addf %18, %15 : vector<1x128xf32>
      %20 = arith.negf %19 : vector<1x128xf32>
      %21 = math.exp %20 : vector<1x128xf32>
      %cst_16 = arith.constant 1.000000e+00 : f32
      %22 = vector.broadcast %cst_16 : f32 to vector<1x128xf32>
      %23 = arith.addf %22, %21 : vector<1x128xf32>
      %24 = arith.divf %22, %23 : vector<1x128xf32>
      %25 = vector.broadcast %12 : f32 to vector<1x128xf32>
      %26 = arith.mulf %25, %16 : vector<1x128xf32>
      %c0_17 = arith.constant 0 : index
      %c0_18 = arith.constant 0 : index
      %27 = vector.load %arg8[%c0_17, %c0_18] : memref<24x128xf32, #tpu.memory_space<vmem>>, vector<24x128xf32>
      %28 = vector.broadcast %13 : vector<1x128xf32> to vector<24x128xf32>
      %29 = arith.addf %27, %28 : vector<24x128xf32>
      %30 = vector.broadcast %24 : vector<1x128xf32> to vector<24x128xf32>
      %31 = arith.mulf %29, %30 : vector<24x128xf32>
      %32 = vector.broadcast %26 : vector<1x128xf32> to vector<24x128xf32>
      %33 = arith.addf %31, %32 : vector<24x128xf32>
      %c0_19 = arith.constant 0 : index
      %c0_20 = arith.constant 0 : index
      %34 = vector.load %arg7[%c0_19, %c0_20] : memref<24x128xf32, #tpu.memory_space<vmem>>, vector<24x128xf32>
      tpu.vector_store %arg7[%c0_19, %c0_20], %33 {strides = array<i32>} : memref<24x128xf32, #tpu.memory_space<vmem>>, vector<24x128xf32>,
    } else {
    }
    return
  }
  func.func @transform_0(%arg0: i32, %arg1: i32, %arg2: i32) -> i32 {
    %c0_i32 = arith.constant 0 : i32
    %c0_i32_0 = arith.constant 0 : i32
    return %c0_i32 : i32
  }
  func.func @transform_1(%arg0: i32, %arg1: i32, %arg2: i32) -> (i32, i32) {
    %c0_i32 = arith.constant 0 : i32
    return %arg0, %arg2 : i32, i32
  }
  func.func @transform_2(%arg0: i32, %arg1: i32, %arg2: i32) -> (i32, i32) {
    %c0_i32 = arith.constant 0 : i32
    return %arg1, %arg2 : i32, i32
  }
  func.func @transform_3(%arg0: i32, %arg1: i32, %arg2: i32) -> (i32, i32) {
    %c0_i32 = arith.constant 0 : i32
    %c0_i32_0 = arith.constant 0 : i32
    return %c0_i32, %arg1 : i32, i32
  }
  func.func @transform_4(%arg0: i32, %arg1: i32, %arg2: i32) -> (i32, i32) {
    %c0_i32 = arith.constant 0 : i32
    return %arg0, %arg1 : i32, i32
  }
}

</mosaic_0001>

<bundles_post_ra>
// kernel: tpu_custom_call.1
= control target key start
LH: loop header
LB: loop body
LE: loop exit
PB: predicated region body
PF: predicated region fallthrough
CT: control target
= control target key end

     0   :  { %10 = vsyncpa [#allocation5], 0  ;;  %s523_s0 = inlined_call_operand.<no memory space> [shape: f32[1], index: 0, kind: input, shape index: {}]   ;;  %s524_s1 = inlined_call_operand.hbm [shape: f32[24,128], index: 1, kind: input, shape index: {}]   ;;  %s525_s2 = inlined_call_operand.hbm [shape: f32[128,128], index: 2, kind: input, shape index: {}]   ;;  %s526_s3 = inlined_call_operand.hbm [shape: f32[8,128], index: 3, kind: input, shape index: {}]   ;;  %s527_s4 = inlined_call_operand.hbm [shape: f32[24,128], index: 4, kind: output, shape index: {}]  }
   0x1   :  { %11 = vsyncpa [#allocation8], 0 }
   0x2   :  { %12 = vsyncpa [#allocation6], 0  ;;  %s428_s15 = smov [#allocation7]   ;;  %s429_s17 = smov [#allocation4]  }
   0x3   :  { %s32_s16 = sshll.u32 %s428_s15, 4  ;;  %s20_s18 = sshll.u32 %s429_s17, 4  ;;  %s33_s16 = int_to_ptr.vmem [resolvable:$true] %s32_s16  ;;  %s21_s18 = int_to_ptr.vmem [resolvable:$true] %s20_s18 }
   0x4   :  { %s350_s19 = scalar_lea.vmem %s33_s16, 2048  ;;  %p355_p1 = scmp.lt.s32.totalorder %s33_s16, %s33_s16 }
   0x5   :  { %p351_p0 = scmp.ne.s32.totalorder %s33_s16, %s350_s19  ;;  %p356_p2 = scmp.lt.s32.totalorder %s350_s19, %s350_s19 }
   0x7   :  { %p357_p3 = por %p356_p2, %p355_p1 }
   0x9   :  { %p358_p4 = pnand %p357_p3, %p351_p0 }
   0xb   :  { %361 = shalt.err (!%p358_p4)
}
   0xc   :  { %s430_s20 = smov 128   ;;  %s431_s21 = smov 8  }
   0xd   :  { %38 = dma.hbm_to_vmem [thread:$0]  %s525_s2, 2048, %s33_s16, [#allocation8], %s430_s20, %s430_s20, %s431_s21  }
   0xe   :  { %s370_s24 = scalar_lea.vmem %s21_s18, 384  ;;  %p375_p6 = scmp.lt.s32.totalorder %s21_s18, %s21_s18 }
   0xf   :  { %p371_p5 = scmp.ne.s32.totalorder %s21_s18, %s370_s24  ;;  %p376_p7 = scmp.lt.s32.totalorder %s370_s24, %s370_s24 }
  0x11   :  { %p377_p8 = por %p376_p7, %p375_p6 }
  0x13   :  { %p378_p9 = pnand %p377_p8, %p371_p5 }
  0x15   :  { %381 = shalt.err (!%p378_p9)
}
  0x16   :  { %26 = dma.hbm_to_vmem [thread:$0]  %s524_s1, 384, %s21_s18, [#allocation5], %s430_s20, %s430_s20, %s431_s21  }
  0x17   :  { %s432_s27 = smov [#allocation9]  }
  0x18   :  { %s45_s28 = sshll.u32 %s432_s27, 4  ;;  %s46_s28 = int_to_ptr.vmem [resolvable:$true] %s45_s28 }
  0x19   :  { %s390_s29 = scalar_lea.vmem %s46_s28, 128  ;;  %p395_p11 = scmp.lt.s32.totalorder %s46_s28, %s46_s28 }
  0x1a   :  { %p391_p10 = scmp.ne.s32.totalorder %s46_s28, %s390_s29  ;;  %p396_p12 = scmp.lt.s32.totalorder %s390_s29, %s390_s29 }
  0x1c   :  { %p397_p13 = por %p396_p12, %p395_p11 }
  0x1e   :  { %p398_p0 = pnand %p397_p13, %p391_p10 }
  0x20   :  { %401 = shalt.err (!%p398_p0)
}
  0x21   :  { %48 = dma.hbm_to_vmem [thread:$0]  %s526_s3, 128, %s46_s28, [#allocation8]  }
  0x22   :  { %422 = dma.done.wait [#allocation5], 384  }
  0x23   :  { %423 = vsyncadd [#allocation5], 4294966912 }
  0x24   :  { %424 = dma.done.wait [#allocation8], 2176  }
  0x25   :  { %425 = vsyncadd [#allocation8], 4294965120  ;;  %v433_v0 = vmov 0.0   ;;  %vm434_vm0 = vmmov 0   ;;  %v86_v1 = vld [vmem:[#allocation7 + $0x78] sm:$0xff]  ;;  %v85_v2 = vld [vmem:[#allocation7 + $0x70] sm:$0xff]  ;;  %v181_v21 = vstv %s523_s0  ;;  %v201_v28 = vlaneseq }
  0x26   :  { %298 = vmatprep.subr.mxu1 %v433_v0  ;;  %257 = vmatprep.subr.mxu0 %v433_v0  ;;  %v84_v3 = vld [vmem:[#allocation7 + $0x68] sm:$0xff]  ;;  %v83_v4 = vld [vmem:[#allocation7 + $0x60] sm:$0xff]  ;;  %v82_v5 = vld [vmem:[#allocation7 + $0x58] sm:$0xff]  ;;  %s435_s0 = smov [#allocation10]  }
  0x27   :  { %292 = vmatprep.mubr.msk.f32.mxu1 %vm434_vm0, %v433_v0  ;;  %289 = vmatprep.mubr.msk.f32.mxu0 %vm434_vm0, %v433_v0  ;;  %v81_v6 = vld [vmem:[#allocation7 + $0x50] sm:$0xff]  ;;  %v80_v7 = vld [vmem:[#allocation7 + $0x48] sm:$0xff]  ;;  %v79_v8 = vld [vmem:[#allocation7 + $0x40] sm:$0xff]  ;;  %v202_v29 = vshrl.u32 %v201_v28, 7  ;;  %s223_s5 = sshll.u32 %s435_s0, 4  ;;  %s224_s5 = int_to_ptr.vmem [resolvable:$true] %s223_s5 }
  0x28   :  { %314 = vmatpush3.xpose.msra.mxu1 %v86_v1  ;;  %258 = vmatpush3.xpose.msra.mxu0 %v86_v1  ;;  %v78_v9 = vld [vmem:[#allocation7 + $0x38] sm:$0xff]  ;;  %v77_v10 = vld [vmem:[#allocation7 + $0x30] sm:$0xff]  ;;  %v76_v11 = vld [vmem:[#allocation7 + $0x28] sm:$0xff]  ;;  %s402_s6 = scalar_lea.vmem %s224_s5, 384  ;;  %p407_p2 = scmp.lt.s32.totalorder %s224_s5, %s224_s5 }
  0x29   :  { %299 = vmatprep.subr.mxu1 %v433_v0  ;;  %259 = vmatprep.subr.mxu0 %v433_v0  ;;  %v75_v12 = vld [vmem:[#allocation7 + $0x20] sm:$0xff]  ;;  %v74_v13 = vld [vmem:[#allocation7 + $0x18] sm:$0xff]  ;;  %v73_v14 = vld [vmem:[#allocation7 + $0x10] sm:$0xff]  ;;  %v203_v31 = vsub.s32 0, %v202_v29  ;;  %p403_p1 = scmp.ne.s32.totalorder %s224_s5, %s402_s6  ;;  %p408_p3 = scmp.lt.s32.totalorder %s402_s6, %s402_s6 }
  0x2a   :  { %v72_v15 = vld [vmem:[#allocation7 + $0x8] sm:$0xff]  ;;  %v71_v16 = vld [vmem:[#allocation7] sm:$0xff]  ;;  %v69_v17 = vld [vmem:[#allocation4 + $0x8] sm:$0xff] }
  0x2b   :  { %v68_v18 = vld [vmem:[#allocation4] sm:$0xff]  ;;  %v70_v19 = vld [vmem:[#allocation4 + $0x10] sm:$0xff]  ;;  %v178_v20 = vld [vmem:[#allocation9 + $0x1] sm:$0x1]  ;;  %p409_p4 = por %p408_p3, %p407_p2 }
  0x2c   :  { %315 = vmatpush3.xpose.msra.mxu1 %v85_v2  ;;  %260 = vmatpush3.xpose.msra.mxu0 %v85_v2  ;;  %v182_v22 = vmul.f32 %v181_v21, %v178_v20  ;;  %v179_v23 = vld [vmem:[#allocation9 + $0x2] sm:$0x1]  ;;  %v180_v30 = vld [vmem:[#allocation9 + $0x3] sm:$0x1]  ;;  %v237_v34 = vld [vmem:[#allocation9] ss:$0 sm:$0xff] }
  0x2d   :  { %300 = vmatprep.subr.mxu1 %v433_v0  ;;  %261 = vmatprep.subr.mxu0 %v433_v0  ;;  %v190_v33 = vmul.f32 %v181_v21, %v180_v30  ;;  %p410_p5 = pnand %p409_p4, %p403_p1 }
  0x2e   :  { %v183_v24 = vadd.f32 %v182_v22, %v179_v23 }
  0x2f   :  { %v211_v39 = vrot.slane %v190_v33, %v203_v31 }
  0x30   :  { %316 = vmatpush3.xpose.msra.mxu1 %v84_v3  ;;  %262 = vmatpush3.xpose.msra.mxu0 %v84_v3  ;;  %v236_v25 = vmul.f32 -1.442695, %v183_v24 }
  0x31   :  { %301 = vmatprep.subr.mxu1 %v433_v0  ;;  %263 = vmatprep.subr.mxu0 %v433_v0 }
  0x32   :  { %338 = vpow2.f32 %v236_v25 }
  0x34   :  { %317 = vmatpush3.xpose.msra.mxu1 %v83_v4  ;;  %264 = vmatpush3.xpose.msra.mxu0 %v83_v4 }
  0x35   :  { %302 = vmatprep.subr.mxu1 %v433_v0  ;;  %265 = vmatprep.subr.mxu0 %v433_v0 }
  0x38   :  { %318 = vmatpush3.xpose.msra.mxu1 %v82_v5  ;;  %266 = vmatpush3.xpose.msra.mxu0 %v82_v5 }
  0x39   :  { %303 = vmatprep.subr.mxu1 %v433_v0  ;;  %267 = vmatprep.subr.mxu0 %v433_v0 }
  0x3c   :  { %319 = vmatpush3.xpose.msra.mxu1 %v81_v6  ;;  %268 = vmatpush3.xpose.msra.mxu0 %v81_v6 }
  0x3d   :  { %304 = vmatprep.subr.mxu1 %v433_v0  ;;  %269 = vmatprep.subr.mxu0 %v433_v0 }
  0x3f   :  { %v339_v26 = vpop.eup %338 }
  0x40   :  { %320 = vmatpush3.xpose.msra.mxu1 %v80_v7  ;;  %270 = vmatpush3.xpose.msra.mxu0 %v80_v7  ;;  %v187_v27 = vadd.f32 1.0, %v339_v26 }
  0x41   :  { %305 = vmatprep.subr.mxu1 %v433_v0  ;;  %271 = vmatprep.subr.mxu0 %v433_v0 }
  0x42   :  { %340 = vrcp.f32 %v187_v27 }
  0x44   :  { %321 = vmatpush3.xpose.msra.mxu1 %v79_v8  ;;  %272 = vmatpush3.xpose.msra.mxu0 %v79_v8 }
  0x45   :  { %306 = vmatprep.subr.mxu1 %v433_v0  ;;  %273 = vmatprep.subr.mxu0 %v433_v0 }
  0x48   :  { %322 = vmatpush3.xpose.msra.mxu1 %v78_v9  ;;  %274 = vmatpush3.xpose.msra.mxu0 %v78_v9 }
  0x49   :  { %307 = vmatprep.subr.mxu1 %v433_v0  ;;  %275 = vmatprep.subr.mxu0 %v433_v0 }
  0x4c   :  { %323 = vmatpush3.xpose.msra.mxu1 %v77_v10  ;;  %276 = vmatpush3.xpose.msra.mxu0 %v77_v10 }
  0x4d   :  { %308 = vmatprep.subr.mxu1 %v433_v0  ;;  %277 = vmatprep.subr.mxu0 %v433_v0 }
  0x4f   :  { %v341_v32 = vpop.eup %340 }
  0x50   :  { %324 = vmatpush3.xpose.msra.mxu1 %v76_v11  ;;  %278 = vmatpush3.xpose.msra.mxu0 %v76_v11  ;;  %v204_v35 = vrot.slane %v341_v32, %v203_v31 }
  0x51   :  { %309 = vmatprep.subr.mxu1 %v433_v0  ;;  %279 = vmatprep.subr.mxu0 %v433_v0 }
  0x54   :  { %325 = vmatpush3.xpose.msra.mxu1 %v75_v12  ;;  %280 = vmatpush3.xpose.msra.mxu0 %v75_v12 }
  0x55   :  { %310 = vmatprep.subr.mxu1 %v433_v0  ;;  %281 = vmatprep.subr.mxu0 %v433_v0 }
  0x58   :  { %326 = vmatpush3.xpose.msra.mxu1 %v74_v13  ;;  %282 = vmatpush3.xpose.msra.mxu0 %v74_v13 }
  0x59   :  { %311 = vmatprep.subr.mxu1 %v433_v0  ;;  %283 = vmatprep.subr.mxu0 %v433_v0 }
  0x5c   :  { %327 = vmatpush3.xpose.msra.mxu1 %v73_v14  ;;  %284 = vmatpush3.xpose.msra.mxu0 %v73_v14 }
  0x5d   :  { %312 = vmatprep.subr.mxu1 %v433_v0  ;;  %285 = vmatprep.subr.mxu0 %v433_v0 }
  0x60   :  { %328 = vmatpush3.xpose.msra.mxu1 %v72_v15  ;;  %286 = vmatpush3.xpose.msra.mxu0 %v72_v15 }
  0x61   :  { %313 = vmatprep.subr.mxu1 %v433_v0  ;;  %287 = vmatprep.subr.mxu0 %v433_v0 }
  0x64   :  { %329 = vmatpush3.xpose.msra.mxu1 %v71_v16  ;;  %288 = vmatpush3.xpose.msra.mxu0 %v71_v16 }
  0x67   :  { %293 = vmatmul.mubr.f32.vlgmr.msra.gmra.mxu1 %v69_v17  ;;  %290 = vmatmul.mubr.f32.vlgmr.msra.gmra.mxu0 %v68_v18 }
  0x68   :  { %295 = vmatprep.mubr.msk.f32.mxu1 %vm434_vm0, %v433_v0 }
  0x6b   :  { %296 = vmatmul.mubr.f32.gmra.mxu1 %v70_v19 }
 0x127   :  { %v158_v36 = vpop.f32.mrf.mxu1  ;;  %v153_v37 = vpop.f32.mrf.mxu0 }
 0x128   :  { %v199_v38 = vadd.f32 %v237_v34, %v158_v36  ;;  %v198_v40 = vadd.f32 %v237_v34, %v153_v37 }
 0x129   :  { %v294_v41 = vpop.f32.mrf.mxu1  ;;  %v291_v42 = vpop.f32.mrf.mxu0 }
 0x12a   :  { %v206_v43 = vmul.f32 %v204_v35, %v199_v38  ;;  %v205_v44 = vmul.f32 %v204_v35, %v198_v40 }
 0x12b   :  { %v163_v45 = vpop.f32.mrf.mxu1 }
 0x12c   :  { %v213_v46 = vadd.f32 %v211_v39, %v206_v43  ;;  %v212_v47 = vadd.f32 %v211_v39, %v205_v44  ;;  %v200_v48 = vadd.f32 %v237_v34, %v163_v45 }
 0x12d   :  { %v297_v49 = vpop.f32.mrf.mxu1 }
 0x12e   :  { %216 = vst [vmem:[#allocation10 + $0x8] sm:$0xff] %v213_v46  ;;  %215 = vst [vmem:[#allocation10] sm:$0xff] %v212_v47  ;;  %v207_v50 = vmul.f32 %v204_v35, %v200_v48 }
 0x130   :  { %v214_v51 = vadd.f32 %v211_v39, %v207_v50 }
 0x132   :  { %217 = vst [vmem:[#allocation10 + $0x10] sm:$0xff] %v214_v51 }
 0x133   :  { %413 = shalt.err (!%p410_p5)
}
 0x134   :  { %229 = dma.vmem_to_hbm [thread:$0]  %s224_s5, 384, %s527_s4, [#allocation6], %s430_s20, %s430_s20, %s431_s21  }
 0x135   :  { %426 = dma.done.wait [#allocation6], 384  }
 0x136   :  { %427 = vsyncadd [#allocation6], 4294966912 }
 0x137   :  { %233 = vsyncpa [#allocation5], 1 }
 0x138   :  { %234 = vsyncpa [#allocation8], 1 }
 0x139   :  { %235 = vsyncpa [#allocation6], 1 }

</bundles_post_ra>
